<compile_context>
chip_gen: v5e
topology: v5e:2x2
jax: 0.10.0
libtpu: 0.0.40
codegen_flags: <defaults>
</compile_context>

<pallas_src>
import functools
import math

import numpy as np
import jax
import jax.numpy as jnp
from jax.experimental import pallas as pl
from jax.experimental.pallas import tpu as pltpu

_LANE = 128
_WIDTHS = (8192, 4096, 2048, 1024, 512, 256, 128)  # candidate lane-dense last dims
_MIN_ROWS_FOR_TILING = 256      # prefer widths that leave at least this many rows
_SMALL_SLAB_BYTES = 256 * 1024  # below this a single full block is fine (no pipeline win)
_TARGET_STEPS = 8               # aim for >= this many pipelined grid steps on big slabs


def _isinf_kernel(x_ref, o_ref):
    # Pure VPU elementwise op; the cast is a no-op when o_ref is already bool.
    o_ref[...] = jnp.isinf(x_ref[...]).astype(o_ref.dtype)


@functools.lru_cache(maxsize=None)
def _chip_params():
    """Returns (per-step double-buffered VMEM budget in bytes, is_v7x)."""
    budget = 10 * 1024 * 1024          # safe under v5e's 16 MiB default scoped VMEM
    is_v7 = False
    try:
        kind = jax.devices()[0].device_kind.lower()
        if "v6" in kind or "v7" in kind:
            budget = 20 * 1024 * 1024  # fits the 32 MiB default scoped VMEM on v6e/v7x
        is_v7 = "v7" in kind
    except Exception:
        pass
    return budget, is_v7


@functools.lru_cache(maxsize=None)
def _build_call(rows, width, tm, in_itemsize, out_dtype_name):
    out_dtype = jnp.bool_ if out_dtype_name == "bool" else jnp.int8
    n = rows * width
    return pl.pallas_call(
        _isinf_kernel,
        out_shape=jax.ShapeDtypeStruct((rows, width), out_dtype),
        grid=(pl.cdiv(rows, tm),),
        in_specs=[pl.BlockSpec((tm, width), lambda i: (i, 0))],
        out_specs=pl.BlockSpec((tm, width), lambda i: (i, 0)),
        compiler_params=pltpu.CompilerParams(
            dimension_semantics=("parallel",)),   # shard row-tiles across v7x's 2 TCs
        cost_estimate=pl.CostEstimate(
            flops=n, transcendentals=0,
            bytes_accessed=n * (in_itemsize + 1)),
    )


_BOOL_OUT_SUPPORTED = {}


def _bool_out_supported():
    """Probe once per backend whether a tiled bool-typed kernel output compiles & is correct."""
    backend = jax.default_backend()
    cached = _BOOL_OUT_SUPPORTED.get(backend)
    if cached is None:
        try:
            probe = jnp.zeros((96, _LANE), jnp.float32)
            probe = probe.at[3, 5].set(jnp.inf).at[70, 127].set(-jnp.inf)
            got = jax.block_until_ready(_build_call(96, _LANE, 32, 4, "bool")(probe))
            cached = bool(jnp.array_equal(got, jnp.isinf(probe)))
        except Exception:
            cached = False   # fall back to int8 output + a single cast
        _BOOL_OUT_SUPPORTED[backend] = cached
    return cached


def isinf_pallas(x):
    """Equivalent of torch.isinf(x): elementwise, returns a bool array of the same shape."""
    orig_shape = x.shape
    n = math.prod(orig_shape)

    # Zero-size tensors: nothing to compute, no kernel launch.
    if n == 0:
        return jnp.zeros(orig_shape, dtype=jnp.bool_)

    dt = x.dtype
    if jnp.issubdtype(dt, jnp.complexfloating):
        # TODO(synk): complex isinf (isinf(re) | isinf(im)) is not routed through the kernel.
        return jnp.isinf(x)
    if not jnp.issubdtype(dt, jnp.floating):
        # torch.isinf on integer/bool tensors is identically False — skip the kernel.
        return jnp.zeros(orig_shape, dtype=jnp.bool_)

    in_bytes = int(np.dtype(dt).itemsize)

    # Widest lane-dense (multiple-of-128) last dim that divides n exactly (no pad copy),
    # preferring widths that leave enough rows to tile the row axis for pipelining.
    width = next((w for w in _WIDTHS
                  if n % w == 0 and n // w >= _MIN_ROWS_FOR_TILING), None)
    if width is None:
        width = next((w for w in _WIDTHS if n % w == 0), _LANE)
    rows, tail = divmod(n, width)

    flat = x.reshape(-1)
    parts = []
    if rows:
        main = flat if tail == 0 else flat[: rows * width]
        x2d = main.reshape(rows, width)

        budget, is_v7 = _chip_params()
        slab_bytes = rows * width * in_bytes
        if rows < 64 or slab_bytes <= _SMALL_SLAB_BYTES:
            tm = rows   # tiny slab: one full block (block == full dims is always legal)
        else:
            # Per-step footprint ≈ 2 (double buffer) * tm * width * (in_bytes + 1 byte out).
            cap = budget // (2 * width * (in_bytes + 1))
            cap = max((cap // 32) * 32, 32)
            # At least ~_TARGET_STEPS pipelined steps; tm a multiple of 32 so the
            # second-minor block dim is tile-legal for f32/bf16 inputs and int8/bool outputs.
            target = max((rows // _TARGET_STEPS // 32) * 32, 32)
            tm = min(cap, target)
            if is_v7:
                # Prefer an even grid so both v7x TensorCores get equal shares.
                g = pl.cdiv(rows, tm)
                if g > 1 and g % 2 == 1:
                    for delta in (32, 64, 96):
                        cand = tm - delta
                        if cand >= 32 and pl.cdiv(rows, cand) % 2 == 0:
                            tm = cand
                            break

        out_name = "bool" if _bool_out_supported() else "int8"
        out2d = _build_call(rows, width, tm, in_bytes, out_name)(x2d)
        out_main = out2d.reshape(rows * width)
        if out_name != "bool":
            out_main = out_main.astype(jnp.bool_)   # fallback path only (rarely taken)
        parts.append(out_main)
    if tail:
        # Ragged remainder (< 128 elements, only when numel % 128 != 0): negligible work.
        # TODO(synk): fold the tail into the kernel with a masked store to avoid the concat.
        parts.append(jnp.isinf(flat[rows * width:]))

    out_flat = parts[0] if len(parts) == 1 else jnp.concatenate(parts)
    return out_flat.reshape(orig_shape)


if __name__ == "__main__":
    key = jax.random.PRNGKey(0)

    # Small NCHW-like input consistent with the elementwise forward.
    x = jax.random.normal(key, (2, 4, 16, 16), dtype=jnp.float32)
    x = x.at[0, 0, 0, 0].set(jnp.inf)
    x = x.at[1, 2, 3, 4].set(-jnp.inf)
    x = x.at[0, 3, 15, 7].set(jnp.inf)
    out = jax.block_until_ready(isinf_pallas(x))
    ref = jnp.isinf(x)
    assert out.shape == x.shape and out.dtype == jnp.bool_
    assert bool(jnp.array_equal(out, ref)), "mismatch vs jnp.isinf reference"

    # Moderate slab (1 MiB f32) exercises the tiled, pipelined multi-block path.
    x_big = jax.random.normal(jax.random.PRNGKey(2), (256, 1024), dtype=jnp.float32)
    x_big = x_big.at[17, 900].set(jnp.inf).at[200, 3].set(-jnp.inf)
    out_big = jax.block_until_ready(isinf_pallas(x_big))
    assert bool(jnp.array_equal(out_big, jnp.isinf(x_big)))

    # Ragged shape (numel not a multiple of 128) exercises the kernel + tail path.
    x_r = jax.random.normal(jax.random.PRNGKey(1), (3, 5, 11), dtype=jnp.float32)
    x_r = x_r.at[1, 2, 3].set(jnp.inf)
    out_r = jax.block_until_ready(isinf_pallas(x_r))
    assert bool(jnp.array_equal(out_r, jnp.isinf(x_r)))

    # Integer input: torch.isinf semantics -> all False, no kernel launch.
    x_i = jnp.arange(2 * 4 * 16, dtype=jnp.int32).reshape(2, 4, 16)
    out_i = jax.block_until_ready(isinf_pallas(x_i))
    assert out_i.dtype == jnp.bool_ and not bool(out_i.any())

    # The actual zero-size case the module is named after.
    x_zero = jnp.zeros((2, 0, 16, 16), dtype=jnp.float32)
    out_zero = jax.block_until_ready(isinf_pallas(x_zero))
    assert out_zero.shape == (2, 0, 16, 16) and out_zero.dtype == jnp.bool_

    print("KERNEL_OK")
</pallas_src>

<mosaic_0001>
module attributes {stable_mosaic.version = 11 : i64} {
  func.func @_isinf_kernel(%arg0: i32, %arg1: memref<32x128xf32, #tpu.memory_space<vmem>>, %arg2: memref<32x128xi32, #tpu.memory_space<vmem>>) attributes {dimension_semantics = [#tpu.dimension_semantics<parallel>], iteration_bounds = array<i64: 3>, scalar_prefetch = 0 : i64, scratch_operands = 0 : i64, tpu.core_type = #tpu.core_type<tc>, window_params = [{transform_indices = @transform_0, window_bounds = array<i64: 32, 128>}, {transform_indices = @transform_1, window_bounds = array<i64: 32, 128>}]} {
    %c0 = arith.constant 0 : index
    %c0_0 = arith.constant 0 : index
    %0 = vector.load %arg1[%c0, %c0_0] : memref<32x128xf32, #tpu.memory_space<vmem>>, vector<32x128xf32>
    %1 = math.absf %0 : vector<32x128xf32>
    %cst = arith.constant 0x7F800000 : f32
    %2 = vector.broadcast %cst : f32 to vector<32x128xf32>
    %3 = arith.cmpf oeq, %1, %2 : vector<32x128xf32>
    %c0_1 = arith.constant 0 : index
    %c0_2 = arith.constant 0 : index
    %4 = vector.load %arg2[%c0_1, %c0_2] : memref<32x128xi32, #tpu.memory_space<vmem>>, vector<32x128xi32>
    %5 = arith.extui %3 : vector<32x128xi1> to vector<32x128xi32>
    %cst_3 = arith.constant dense<0> : vector<32x128xi32>
    %6 = arith.cmpi ne, %4, %cst_3 : vector<32x128xi32>
    tpu.vector_store %arg2[%c0_1, %c0_2], %5 {strides = array<i32>} : memref<32x128xi32, #tpu.memory_space<vmem>>, vector<32x128xi32>,
    return
  }
  func.func @transform_0(%arg0: i32) -> (i32, i32) {
    %c0_i32 = arith.constant 0 : i32
    %c0_i32_0 = arith.constant 0 : i32
    return %arg0, %c0_i32 : i32, i32
  }
  func.func @transform_1(%arg0: i32) -> (i32, i32) {
    %c0_i32 = arith.constant 0 : i32
    %c0_i32_0 = arith.constant 0 : i32
    return %arg0, %c0_i32 : i32, i32
  }
}

module attributes {stable_mosaic.version = 11 : i64} {
  func.func @_isinf_kernel(%arg0: i32, %arg1: memref<1x2048xf32, #tpu.memory_space<vmem>>, %arg2: memref<1x2048xi8, #tpu.memory_space<vmem>>) attributes {dimension_semantics = [#tpu.dimension_semantics<parallel>], iteration_bounds = array<i64: 1>, scalar_prefetch = 0 : i64, scratch_operands = 0 : i64, tpu.core_type = #tpu.core_type<tc>, window_params = [{transform_indices = @transform_0, window_bounds = array<i64: 1, 2048>}, {transform_indices = @transform_1, window_bounds = array<i64: 1, 2048>}]} {
    %c0 = arith.constant 0 : index
    %c0_0 = arith.constant 0 : index
    %0 = vector.load %arg1[%c0, %c0_0] : memref<1x2048xf32, #tpu.memory_space<vmem>>, vector<1x2048xf32>
    %1 = math.absf %0 : vector<1x2048xf32>
    %cst = arith.constant 0x7F800000 : f32
    %2 = vector.broadcast %cst : f32 to vector<1x2048xf32>
    %3 = arith.cmpf oeq, %1, %2 : vector<1x2048xf32>
    %4 = arith.extui %3 : vector<1x2048xi1> to vector<1x2048xi8>
    %c0_1 = arith.constant 0 : index
    %c0_2 = arith.constant 0 : index
    %5 = vector.load %arg2[%c0_1, %c0_2] : memref<1x2048xi8, #tpu.memory_space<vmem>>, vector<1x2048xi8>
    tpu.vector_store %arg2[%c0_1, %c0_2], %4 {strides = array<i32>} : memref<1x2048xi8, #tpu.memory_space<vmem>>, vector<1x2048xi8>,
    return
  }
  func.func @transform_0(%arg0: i32) -> (i32, i32) {
    %c0_i32 = arith.constant 0 : i32
    %c0_i32_0 = arith.constant 0 : i32
    return %arg0, %c0_i32 : i32, i32
  }
  func.func @transform_1(%arg0: i32) -> (i32, i32) {
    %c0_i32 = arith.constant 0 : i32
    %c0_i32_0 = arith.constant 0 : i32
    return %arg0, %c0_i32 : i32, i32
  }
}

</mosaic_0001>

<bundles_post_ra>
// kernel: tpu_custom_call.1
= control target key start
LH: loop header
LB: loop body
LE: loop exit
PB: predicated region body
PF: predicated region fallthrough
CT: control target
= control target key end

     0   :  { %6 = vsyncpa [#allocation3], 0  ;;  %s454_s0 = inlined_call_operand.hbm [shape: f32[96,128], index: 0, kind: input, shape index: {}]   ;;  %s455_s1 = inlined_call_operand.vmem [shape: s32[96,128], index: 1, kind: output, shape index: {}]  }
   0x1   :  { %8 = vsyncpa [#allocation3 + $0x1], 0  ;;  %s363_s6 = smov 0   ;;  %s365_s7 = smov 0  }
   0x2   :  { %s367_s8 = smov 0   ;;  %s369_s9 = smov 0  }
   0x3 LB: > { %s228_s10 = sadd.s32 4294967295, %s348_s9   ;;  %s383_s11 = sadd.s32 1, %s348_s9   ;;  %s348_s9 = sphi %s369_s9, %s462_s9   ;;  %s344_s8 = sphi %s367_s8, %s461_s8   ;;  %s340_s7 = sphi %s365_s7, %s460_s7   ;;  %s336_s6 = sphi %s363_s6, %s459_s6  }
   0x4   : > { %s18_s12 = ssub.s32 %s348_s9, %s383_s11  ;;  %s21_s13 = sadd.s32 1, %s344_s8 }
   0x5   : > { %p19_p0 = scmp.eq.s32.totalorder %s18_s12, 0  ;;  %p28_p1 = scmp.ne.s32.totalorder %s344_s8, %s340_s7 }
   0x6   : > { %p29_p2 = scmp.eq.s32.totalorder %s348_s9, 0  ;;  %p34_p3 = scmp.ne.s32.totalorder %s340_s7, %s336_s6 }
   0x7   : > { %s393_s14 = scalar_select %p19_p0, %s344_s8, %s21_s13  }
   0x8   : > { %p395_p4 = por %p29_p2, %p28_p1  ;;  %p35_p5 = scmp.eq.s32.totalorder %s228_s10, 0 }
   0x9   : > { %p248_p6 = scmp.lt.s32.totalorder %s348_s9, 3  ;;  %s84_s17 = sand.u32 1, %s344_s8  }
   0xa   : > { %p402_p7 = por %p35_p5, %p34_p3  ;;  %s232_s18 = sshll.u32 %s84_s17, 5 }
   0xb   : > { %s241_s19 = sshll.u32 %s348_s9, 5  ;;  %s88_s23 = scalar_lea.vmem [#allocation2], %s232_s18 }
   0xc   : > { %s93_s22 = scalar_lea.hbm %s454_s0, %s241_s19  ;;  %s96_s24 = sshll.u32 %s88_s23, 4  ;;  %s97_s24 = int_to_ptr.vmem [resolvable:$true] %s96_s24 }
   0xd   : > { %s94_s25 = sshll.u32 %s93_s22, 4  ;;  %p413_p8 = pnand %p248_p6, %p395_p4  ;;  %s95_s25 = int_to_ptr.hbm [resolvable:$true] %s94_s25 }
   0xe   : > { %p235_p9 = scmp.ge.s32.totalorder %s348_s9, 1  ;;  %s85_s27 = scalar_lea.sflag [#allocation3], %s84_s17 }
   0xf   : > { %s284_s28 = sshra.s32 %s95_s25, 4  ;;  %p288_p11 = pneg %p413_p8  ;;  %s285_s28 = int_to_ptr.hbm [resolvable:$true] %s284_s28 }
  0x10   : > { %s286_s29 = scalar_lea.hbm %s285_s28, 32  ;;  %s291_s3 = scalar_lea.hbm %s454_s0, 96 }
  0x11   : > { %p287_p10 = scmp.ne.s32.totalorder %s285_s28, %s286_s29  ;;  %p292_p0 = scmp.lt.s32.totalorder %s285_s28, %s454_s0 }
  0x12   : > { %p293_p1 = scmp.lt.s32.totalorder %s291_s3, %s286_s29 }
  0x13   : > { %p289_p12 = pnand %p288_p11, %p287_p10 }
  0x14   : > { %p294_p2 = por %p293_p1, %p292_p0 }
  0x15   : > { %p290_p13 = pneg %p289_p12 }
  0x17   : > { %p295_p3 = pnand %p294_p2, %p290_p13 }
  0x19   : > { %298 = shalt.err (!%p295_p3)
}
  0x1a   : > { %s350_s6 = smov 128   ;;  %s351_s12 = smov 8  }
  0x1b   : > { %247 = dma.hbm_to_vmem [thread:$0]  (!%p413_p8), %s95_s25, 512, %s97_s24, %s85_s27, %s350_s6, %s350_s6, %s351_s12  }
  0x1c   : > { %p104_p4 = scmp.lt.s32.totalorder %s348_s9, 4 }
  0x1e   : > { %p105_p5 = pnand %p235_p9, %p104_p4 }
  0x1f   : > { %s110_s13 = sand.u32 (!%p105_p5), 1, %s340_s7  }
  0x20   : > { %108 = sbr.rel (%p105_p5) target bundleno = 48 (0x30), region = 24  ;;  %s236_s15 = sshll.u32 (!%p105_p5), %s110_s13, 5 }
  0x21   : > { %s111_s17 = scalar_lea.sflag (!%p105_p5), [#allocation3], %s110_s13  ;;  %s114_s18 = scalar_lea.vmem (!%p105_p5), [#allocation2], %s236_s15 }
  0x25   : > { %331 = dma.done.wait (%p402_p7), %s111_s17, 512  }
  0x26   : > { %333 = vsyncadd (%p402_p7), %s111_s17, 4294966784  ;;  %s237_s19 = sshll.u32 %s228_s10, 2  ;;  %v141_v0 = vld [vmem:[%s114_s18] sm:$0xff]  ;;  %v142_v1 = vld [vmem:[%s114_s18 + $0x8] sm:$0xff]  ;;  %v352_v8 = vmov 0  }
  0x27   : > { %p136_p6 = scmp.lt.s32.totalorder %s237_s19, 11  ;;  %v143_v2 = vld [vmem:[%s114_s18 + $0x10] sm:$0xff]  ;;  %v145_v3 = vand.u32 2147483647, %v141_v0  ;;  %v146_v4 = vand.u32 2147483647, %v142_v1 }
  0x28   : > { %v147_v5 = vand.u32 2147483647, %v143_v2  ;;  %v144_v6 = vld [vmem:[%s114_s18 + $0x18] sm:$0xff] }
  0x29   : > { %s464_s19 = smov (!%p136_p6, %s237_s19), 11  ;;  %vm149_vm0 = vcmp.eq.f32.partialorder %v145_v3, inf  ;;  %vm150_vm1 = vcmp.eq.f32.partialorder %v146_v4, inf  ;;  %v148_v7 = vand.u32 2147483647, %v144_v6 }
  0x2a   : > { %s238_s20 = sshll.u32 %s464_s19, 3  ;;  %vm151_vm2 = vcmp.eq.f32.partialorder %v147_v5, inf  ;;  %v153_v9 = vsel %vm149_vm0, 1, %v352_v8  ;;  %v154_v10 = vsel %vm150_vm1, 1, %v352_v8 }
  0x2b   : > { %s139_s23 = scalar_lea.vmem %s455_s1, %s238_s20  ;;  %v155_v11 = vsel %vm151_vm2, 1, %v352_v8  ;;  %vm152_vm3 = vcmp.eq.f32.partialorder %v148_v7, inf }
  0x2c   : > { %157 = vst [vmem:[%s139_s23] sm:$0xff] %v153_v9  ;;  %v156_v12 = vsel %vm152_vm3, 1, %v352_v8 }
  0x2d   : > { %158 = vst [vmem:[%s139_s23 + $0x8] sm:$0xff] %v154_v10 }
  0x2e   : > { %159 = vst [vmem:[%s139_s23 + $0x10] sm:$0xff] %v155_v11 }
  0x2f   : > { %160 = vst [vmem:[%s139_s23 + $0x18] sm:$0xff] %v156_v12 }
  0x30 PF: > { %p11_p7 = scmp.ge.s32.totalorder %s383_s11, 5   ;;  %s459_s6 = smov %s340_s7 }
  0x31   : > { %s460_s7 = smov %s344_s8  ;;  %s461_s8 = smov %s393_s14 }
  0x32   : > { %s462_s9 = smov %s383_s11  ;;  %13 = sbr.rel (!%p11_p7) target bundleno = 3 (0x3), region = 64 }
  0x37   :  { %183 = vsyncpa [#allocation3], 1 }
  0x38   :  { %185 = vsyncpa [#allocation3 + $0x1], 1 }

// kernel: tpu_custom_call.1
= control target key start
LH: loop header
LB: loop body
LE: loop exit
PB: predicated region body
PF: predicated region fallthrough
CT: control target
= control target key end

     0   :  { %6 = vsyncpa [#allocation3], 0  ;;  %s462_s0 = inlined_call_operand.hbm [shape: f32[1,2048], index: 0, kind: input, shape index: {}]   ;;  %s463_s1 = inlined_call_operand.hbm [shape: s8[1,2048], index: 1, kind: output, shape index: {}]  }
   0x1   :  { %7 = vsyncpa [#allocation4], 0  ;;  %s13_s8 = sshll.u32 %s462_s0, 4  ;;  %s325_s9 = smov [#allocation2]   ;;  %s14_s8 = int_to_ptr.hbm [resolvable:$true] %s13_s8 }
   0x2   :  { %s15_s10 = sshll.u32 %s325_s9, 4  ;;  %s16_s10 = int_to_ptr.vmem [resolvable:$true] %s15_s10 }
   0x3   :  { %18 = dma.hbm_to_vmem [thread:$0]  %s14_s8, 256, %s16_s10, [#allocation3]  }
   0x4   :  { %321 = dma.done.wait [#allocation3], 256  }
   0x5   :  { %322 = vsyncadd [#allocation3], 4294967040  ;;  %v326_v0 = vmov 286326784   ;;  %v327_v2 = vmov 858989090   ;;  %vm464_vm0 = vcmask 1040384  }
   0x6   :  { %v34_v1 = vunpack.c.l.s4 %v326_v0  ;;  %v38_v3 = vunpack.c.l.s4 %v327_v2  ;;  %v328_v4 = vmov 1431651396   ;;  %v329_v6 = vmov 2004313702   ;;  %v25_v8 = vld [vmem:[#allocation2] sm:$0xff]  ;;  %v26_v9 = vld [vmem:[#allocation2 + $0x8] sm:$0xff] }
   0x7   :  { %v42_v5 = vunpack.c.l.s4 %v328_v4  ;;  %v46_v7 = vunpack.c.l.s4 %v329_v6  ;;  %vm213_vm1 = vsmask.f32 0  ;;  %vm215_vm2 = vcmask 1041409   ;;  %s331_s0 = smov [#allocation5]   ;;  %s256_s14 = sshll.u32 %s463_s1, 4  ;;  %s257_s14 = int_to_ptr.hbm [resolvable:$true] %s256_s14 }
   0x8   :  { %v35_v10 = vunpack.c.0.s8 %v34_v1  ;;  %v39_v11 = vunpack.c.0.s8 %v38_v3  ;;  %v27_v13 = vand.u32 2147483647, %v25_v8  ;;  %v28_v14 = vand.u32 2147483647, %v26_v9  ;;  %vm346_vm7 = vmand %vm464_vm0, %vm213_vm1  ;;  %s254_s11 = sshll.u32 %s331_s0, 4  ;;  %s255_s11 = int_to_ptr.vmem [resolvable:$true] %s254_s11 }
   0x9   :  { %v43_v12 = vunpack.c.0.s8 %v42_v5  ;;  %v47_v15 = vunpack.c.0.s8 %v46_v7  ;;  %vm216_vm3 = vsmask.f32 1024  ;;  %vm466_vm6 = vcmask 1042434  }
   0xa   :  { %vm29_vm4 = vcmp.eq.f32.partialorder %v27_v13, inf  ;;  %vm30_vm5 = vcmp.eq.f32.partialorder %v28_v14, inf  ;;  %vm220_vm8 = vsmask.f32 2048  ;;  %v330_v17 = vmov 0   ;;  %vm352_vm9 = vmand %vm215_vm2, %vm216_vm3  ;;  %v243_v14 = vld [vmem:[#allocation5] sm:$0xff] }
   0xb   :  { %v31_v18 = vsel %vm29_vm4, 1, %v330_v17  ;;  %v32_v19 = vsel %vm30_vm5, 1, %v330_v17  ;;  %vm223_vm10 = vcmask 1043459   ;;  %vm224_vm11 = vsmask.f32 3072  ;;  %vm218_vm1 = vmor %vm352_vm9, %vm346_vm7 }
   0xc   :  { %v36_v21 = vperm.slane %v31_v18, %v35_v10  ;;  %v40_v22 = vperm.slane %v31_v18, %v39_v11  ;;  %v44_v23 = vperm.slane %v31_v18, %v43_v12  ;;  %v48_v24 = vperm.slane %v31_v18, %v47_v15  ;;  %vm221_vm0 = vmand %vm466_vm6, %vm220_vm8 }
   0xd   :  { %v52_v25 = vperm.slane %v32_v19, %v35_v10  ;;  %v56_v26 = vperm.slane %v32_v19, %v39_v11  ;;  %v60_v27 = vperm.slane %v32_v19, %v43_v12  ;;  %v64_v28 = vperm.slane %v32_v19, %v47_v15  ;;  %vm375_vm8 = vmor %vm221_vm0, %vm218_vm1 }
   0xe   :  { %vm65_vm12 = vcmp.ne.s32.totalorder %v36_v21, 0  ;;  %vm66_vm13 = vcmp.ne.s32.totalorder %v40_v22, 0  ;;  %vm67_vm14 = vcmp.ne.s32.totalorder %v44_v23, 0  ;;  %vm68_vm15 = vcmp.ne.s32.totalorder %v48_v24, 0 }
   0xf   :  { %vm69_vm2 = vcmp.ne.s32.totalorder %v52_v25, 0  ;;  %vm70_vm3 = vcmp.ne.s32.totalorder %v56_v26, 0  ;;  %vm71_vm4 = vcmp.ne.s32.totalorder %v60_v27, 0  ;;  %vm72_vm5 = vcmp.ne.s32.totalorder %v64_v28, 0 }
  0x10   :  { %v73_v29 = vsel %vm65_vm12, 1, %v330_v17  ;;  %v74_v30 = vsel %vm66_vm13, 1, %v330_v17  ;;  %v75_v31 = vsel %vm67_vm14, 1, %v330_v17  ;;  %v76_v32 = vsel %vm68_vm15, 1, %v330_v17  ;;  %vm225_vm13 = vmand %vm223_vm10, %vm224_vm11 }
  0x11   :  { %v77_v33 = vsel %vm69_vm2, 1, %v330_v17  ;;  %v78_v34 = vsel %vm70_vm3, 1, %v330_v17  ;;  %v79_v35 = vsel %vm71_vm4, 1, %v330_v17  ;;  %v80_v36 = vsel %vm72_vm5, 1, %v330_v17  ;;  %vm226_vm2 = vmor %vm225_vm13, %vm375_vm8 }
  0x12   :  { %v81_v37 = vpack.c.b16 %v74_v30, %v73_v29  ;;  %v82_v38 = vpack.c.b16 %v76_v32, %v75_v31  ;;  %vm465_vm12 = vcmask 1044484   ;;  %v84_v41 = vpack.c.b16 %v78_v34, %v77_v33 }
  0x13   :  { %v85_v42 = vpack.c.b16 %v80_v36, %v79_v35  ;;  %vm228_vm14 = vsmask.f32 4096  ;;  %vm231_vm0 = vcmask 1045509   ;;  %vm232_vm9 = vsmask.f32 5120 }
  0x14   :  { %v83_v40 = vpack.c.b8 %v82_v38, %v81_v37  ;;  %vm229_vm7 = vmand %vm465_vm12, %vm228_vm14  ;;  %vm187_vm4 = vcmask 1046534   ;;  %vm236_vm8 = vsmask.f32 6144  ;;  %vm239_vm13 = vcmask 1047559  }
  0x15   :  { %v86_v44 = vpack.c.b8 %v85_v42, %v84_v41  ;;  %vm385_vm1 = vmor %vm229_vm7, %vm226_vm2  ;;  %vm240_vm7 = vsmask.f32 7168 }
  0x16   :  { %vm87_vm15 = vnez %v83_v40  ;;  %vm389_vm10 = vmand %vm231_vm0, %vm232_vm9 }
  0x17   :  { %v89_v43 = vsel %vm87_vm15, 16843009, %v330_v17  ;;  %vm88_vm11 = vnez %v86_v44  ;;  %vm234_vm5 = vmor %vm389_vm10, %vm385_vm1  ;;  %vm483_vm1 = vcmask 1044484   ;;  %vm193_vm10 = vcmask 1043456  }
  0x18   :  { %92 = vst [vmem:[#allocation1] ss:$9 sm:$0xff] %v89_v43  ;;  %v90_v47 = vsel %vm88_vm11, 16843009, %v330_v17  ;;  %vm237_vm11 = vmand %vm187_vm4, %vm236_vm8 }
  0x19   :  { %vm413_vm8 = vmor %vm237_vm11, %vm234_vm5  ;;  %vm484_vm5 = vcmask 1041408  }
  0x1f   :  { %v93_v48 = vld [vmem:[#allocation1] sm:$0xff]  ;;  %v95_v49 = vld [vmem:[#allocation1 + $0x9] sm:$0xff]  ;;  %v97_v50 = vld [vmem:[#allocation1 + $0x12] sm:$0xff] }
  0x20   :  { %v99_v51 = vld [vmem:[#allocation1 + $0x1b] sm:$0xff]  ;;  %v101_v52 = vld [vmem:[#allocation1 + $0x24] sm:$0xff]  ;;  %v103_v53 = vld [vmem:[#allocation1 + $0x2d] sm:$0xff]  ;;  %vm127_vm14 = vnez %v93_v48  ;;  %vm128_vm15 = vnez %v95_v49  ;;  %vm129_vm2 = vnez %v97_v50 }
  0x21   :  { %v105_v54 = vld [vmem:[#allocation1 + $0x36] sm:$0xff]  ;;  %v107_v55 = vld [vmem:[#allocation1 + $0x3f] sm:$0xff]  ;;  %vm130_vm0 = vnez %v99_v51  ;;  %vm131_vm9 = vnez %v101_v52  ;;  %vm132_vm3 = vnez %v103_v53  ;;  %v143_v56 = vsel %vm127_vm14, 16843009, %v330_v17 }
  0x22   :  { %110 = vst [vmem:[#allocation1] ss:$9 sm:$0xff] %v90_v47  ;;  %vm133_vm12 = vnez %v105_v54  ;;  %vm134_vm6 = vnez %v107_v55  ;;  %v144_v57 = vsel %vm128_vm15, 16843009, %v330_v17  ;;  %v145_v58 = vsel %vm129_vm2, 16843009, %v330_v17 }
  0x23   :  { %v146_v59 = vsel %vm130_vm0, 16843009, %v330_v17  ;;  %v147_v60 = vsel %vm131_vm9, 16843009, %v330_v17  ;;  %v148_v61 = vsel %vm132_vm3, 16843009, %v330_v17 }
  0x24   :  { %v149_v62 = vsel %vm133_vm12, 16843009, %v330_v17  ;;  %v150_v63 = vsel %vm134_vm6, 16843009, %v330_v17  ;;  %v159_v0 = vrot.slane %v144_v57, 7  ;;  %v160_v1 = vrot.slane %v145_v58, 6  ;;  %vm419_vm12 = vmand %vm239_vm13, %vm240_vm7 }
  0x25   :  { %v161_v3 = vrot.slane %v146_v59, 5  ;;  %v162_v4 = vrot.slane %v147_v60, 4  ;;  %v163_v5 = vrot.slane %v148_v61, 3  ;;  %v164_v6 = vrot.slane %v149_v62, 2  ;;  %vm242_vm13 = vmor %vm419_vm12, %vm413_vm8 }
  0x26   :  { %v165_v8 = vrot.slane %v150_v63, 1  ;;  %vm481_vm6 = vcmask 1040384   ;;  %vm191_vm3 = vcmask 1045508   ;;  %vm482_vm14 = vcmask 1042434  }
  0x27   :  { %v176_v9 = vsel %vm481_vm6, %v143_v56, %v159_v0  ;;  %v180_v10 = vsel %vm482_vm14, %v160_v1, %v161_v3  ;;  %v186_v11 = vsel %vm483_vm1, %v162_v4, %v163_v5  ;;  %vm485_vm1 = vcmask 1040384  }
  0x28   :  { %v182_v12 = vsel %vm484_vm5, %v176_v9, %v180_v10  ;;  %v190_v13 = vsel %vm187_vm4, %v164_v6, %v165_v8  ;;  %vm486_vm5 = vcmask 1042434  }
  0x29   :  { %v192_v15 = vsel %vm191_vm3, %v186_v11, %v190_v13  ;;  %v111_v16 = vld [vmem:[#allocation1] sm:$0xff]  ;;  %v113_v18 = vld [vmem:[#allocation1 + $0x9] sm:$0xff]  ;;  %v115_v19 = vld [vmem:[#allocation1 + $0x12] sm:$0xff] }
  0x2a   :  { %v194_v20 = vsel %vm193_vm10, %v182_v12, %v192_v15  ;;  %v117_v21 = vld [vmem:[#allocation1 + $0x1b] sm:$0xff]  ;;  %v119_v22 = vld [vmem:[#allocation1 + $0x24] sm:$0xff]  ;;  %v121_v23 = vld [vmem:[#allocation1 + $0x2d] sm:$0xff]  ;;  %vm136_vm15 = vnez %v113_v18  ;;  %vm137_vm2 = vnez %v115_v19  ;;  %vm135_vm14 = vnez %v111_v16 }
  0x2b   :  { %v244_v24 = vsel %vm242_vm13, %v194_v20, %v243_v14  ;;  %v123_v25 = vld [vmem:[#allocation1 + $0x36] sm:$0xff]  ;;  %v125_v26 = vld [vmem:[#allocation1 + $0x3f] sm:$0xff]  ;;  %vm138_vm7 = vnez %v117_v21  ;;  %vm139_vm0 = vnez %v119_v22  ;;  %vm140_vm9 = vnez %v121_v23 }
  0x2c   :  { %245 = vst [vmem:[#allocation5] sm:$0xff] %v244_v24  ;;  %vm141_vm11 = vnez %v123_v25  ;;  %vm142_vm6 = vnez %v125_v26  ;;  %v152_v27 = vsel %vm136_vm15, 16843009, %v330_v17  ;;  %v153_v28 = vsel %vm137_vm2, 16843009, %v330_v17 }
  0x2d   :  { %v154_v29 = vsel %vm138_vm7, 16843009, %v330_v17  ;;  %v155_v30 = vsel %vm139_vm0, 16843009, %v330_v17  ;;  %v156_v31 = vsel %vm140_vm9, 16843009, %v330_v17 }
  0x2e   :  { %v157_v32 = vsel %vm141_vm11, 16843009, %v330_v17  ;;  %v158_v33 = vsel %vm142_vm6, 16843009, %v330_v17  ;;  %v166_v34 = vrot.slane %v152_v27, 7  ;;  %v167_v35 = vrot.slane %v153_v28, 6 }
  0x2f   :  { %v168_v36 = vrot.slane %v154_v29, 5  ;;  %v169_v37 = vrot.slane %v155_v30, 4  ;;  %v151_v38 = vsel %vm135_vm14, 16843009, %v330_v17  ;;  %v170_v39 = vrot.slane %v156_v31, 3  ;;  %v246_v17 = vld [vmem:[#allocation5 + $0x8] sm:$0xff] }
  0x30   :  { %v171_v40 = vrot.slane %v157_v32, 2  ;;  %v172_v41 = vrot.slane %v158_v33, 1  ;;  %v198_v42 = vsel %vm485_vm1, %v151_v38, %v166_v34  ;;  %vm487_vm15 = vcmask 1041408  }
  0x31   :  { %v201_v43 = vsel %vm486_vm5, %v167_v35, %v168_v36  ;;  %vm488_vm2 = vcmask 1044484  }
  0x32   :  { %v202_v44 = vsel %vm487_vm15, %v198_v42, %v201_v43  ;;  %v205_v45 = vsel %vm488_vm2, %v169_v37, %v170_v39  ;;  %v208_v46 = vsel %vm187_vm4, %v171_v40, %v172_v41 }
  0x33   :  { %v209_v47 = vsel %vm191_vm3, %v205_v45, %v208_v46 }
  0x34   :  { %v210_v48 = vsel %vm193_vm10, %v202_v44, %v209_v47 }
  0x35   :  { %v247_v49 = vsel %vm242_vm13, %v210_v48, %v246_v17 }
  0x36   :  { %248 = vst [vmem:[#allocation5 + $0x8] sm:$0xff] %v247_v49 }
  0x37   :  { %259 = dma.vmem_to_hbm [thread:$0]  %s255_s11, 256, %s257_s14, [#allocation4]  }
  0x38   :  { %323 = dma.done.wait [#allocation4], 256  }
  0x39   :  { %324 = vsyncadd [#allocation4], 4294967040 }
  0x3a   :  { %264 = vsyncpa [#allocation3], 1 }
  0x3b   :  { %265 = vsyncpa [#allocation4], 1 }

</bundles_post_ra>
